<compile_context>
chip_gen: v7x
topology: tpu7x:2x2x1
jax: 0.10.0
libtpu: 0.0.40
codegen_flags: <defaults>
</compile_context>

<pallas_src>
import jax
import jax.numpy as jnp
from jax.experimental import pallas as pl
from jax.experimental.pallas import tpu as pltpu


def _round_up(n, m):
    return ((n + m - 1) // m) * m


def _make_reg_kernel(n_fc):
    """MLP kernel in transposed (feature-major, batch-on-lanes) layout.

    Ref order:
      xT   (in_rows, TILE_B)                        pipelined batch tile
      [WkT (Hk_p, Hk-1_p), bk (Hk_p, 1)] * n_fc     resident (constant index)
      WoutT (8, Hlast_p), bout (8, 1)               row 0 is the real output
      out  (8, TILE_B)                              row 0 = predictions
    """

    def kernel(x_ref, *rest):
        param_refs = rest[:-1]
        out_ref = rest[-1]

        h = x_ref[...]                                    # (in_rows, TILE_B)
        idx = 0
        for _ in range(n_fc):
            w = param_refs[idx][...]                      # (Hout_p, Hin_p)
            b = param_refs[idx + 1][...]                  # (Hout_p, 1)
            idx += 2
            h = jnp.maximum(
                jnp.dot(w, h, preferred_element_type=jnp.float32) + b, 0.0)

        w_out = param_refs[idx][...]                      # (8, Hlast_p)
        b_out = param_refs[idx + 1][...]                  # (8, 1)
        # Lane-dense (8, TILE_B) store; only row 0 carries real predictions.
        out_ref[...] = jnp.dot(w_out, h,
                               preferred_element_type=jnp.float32) + b_out

    return kernel


def prepare_reg_params(user_emb, item_emb, fc_params, out_params):
    """One-time parameter prep (hoisted out of the per-call forward path).

    Every Linear weight is transposed (feature-major kernel layout) and
    zero-padded so feature widths are multiples of 8 sublanes.  The 1-wide
    output layer is embedded as row 0 of an (8, H) weight so the kernel's
    store is a full, unmasked (8, TILE_B) block.
    """
    user_emb = jnp.asarray(user_emb, jnp.float32)
    item_emb = jnp.asarray(item_emb, jnp.float32)
    E = int(user_emb.shape[1])
    assert int(item_emb.shape[1]) == E, "user/item embedding dims must match"
    w0 = jnp.asarray(fc_params[0][0], jnp.float32)
    assert int(w0.shape[0]) == 2 * E, (
        "layers[0] must equal 2 * emb_dim (got %d vs %d)"
        % (int(w0.shape[0]), 2 * E))

    in_rows = _round_up(2 * E, 8)
    params = []
    prev_p = in_rows
    for (w, b) in fc_params:
        w = jnp.asarray(w, jnp.float32)
        b = jnp.asarray(b, jnp.float32).reshape(-1)
        h_in, h_out = int(w.shape[0]), int(w.shape[1])
        h_out_p = _round_up(h_out, 8)
        wt = jnp.zeros((h_out_p, prev_p), jnp.float32)
        wt = wt.at[:h_out, :h_in].set(w.T)
        bt = jnp.zeros((h_out_p, 1), jnp.float32).at[:h_out, 0].set(b)
        params += [wt, bt]
        prev_p = h_out_p

    w_out, b_out = out_params
    w_out = jnp.asarray(w_out, jnp.float32)
    b_out = jnp.asarray(b_out, jnp.float32).reshape(-1)
    wt = jnp.zeros((8, prev_p), jnp.float32)
    wt = wt.at[0, :int(w_out.shape[0])].set(w_out[:, 0])
    bt = jnp.zeros((8, 1), jnp.float32).at[0, 0].set(b_out[0])
    params += [wt, bt]

    return dict(user_emb=user_emb, item_emb=item_emb, params=tuple(params),
                emb_dim=E, in_rows=in_rows, n_fc=len(fc_params))


def reg_forward(user_ids, item_ids, prepared, *, tile_b=None):
    """REG forward pass (eval mode).  Returns f32 [B, 1] predictions."""
    B = int(user_ids.shape[0])
    E = prepared["emb_dim"]
    in_rows = prepared["in_rows"]
    n_fc = prepared["n_fc"]
    params = prepared["params"]

    # 256-row tiles for the 256-wide MXU on v6e/v7x; tiny batches (and v5e's
    # 128-wide MXU) stay at 128.
    if tile_b is None:
        tile_b = min(256, _round_up(max(B, 1), 128))
    b_pad = _round_up(max(B, 1), tile_b)
    num_tiles = b_pad // tile_b

    # Embedding gather done by XLA in the wrapper (no in-kernel DMAs), then
    # laid out feature-major so the batch rides the 128-lane axis.  Padded
    # batch columns are zero (no wasted gathers).
    ue = prepared["user_emb"][user_ids.astype(jnp.int32)]     # (B, E)
    ie = prepared["item_emb"][item_ids.astype(jnp.int32)]     # (B, E)
    x = jnp.concatenate([ue, ie], axis=1)                     # (B, 2E)
    xT = jnp.zeros((in_rows, b_pad), jnp.float32).at[:2 * E, :B].set(x.T)

    kernel = _make_reg_kernel(n_fc)

    x_spec = pl.BlockSpec((in_rows, tile_b), lambda i: (0, i))
    # Whole-array constant-index params: resident in VMEM across grid steps.
    param_specs = [pl.BlockSpec(tuple(p.shape), lambda i: (0, 0))
                   for p in params]
    out_spec = pl.BlockSpec((8, tile_b), lambda i: (0, i))

    # Advisory cost hint for XLA's scheduler.
    dims = [in_rows] + [int(params[2 * k].shape[0]) for k in range(n_fc)] + [8]
    flops = 2 * b_pad * sum(dims[k] * dims[k + 1] for k in range(len(dims) - 1))
    param_bytes = sum(int(p.size) * 4 for p in params)
    bytes_accessed = in_rows * b_pad * 4 + param_bytes + 8 * b_pad * 4
    cost = pl.CostEstimate(flops=flops, transcendentals=0,
                           bytes_accessed=bytes_accessed)

    # VMEM limit from actual footprint (double-buffered tiles + params),
    # with headroom — a few MiB here instead of a flat 32 MiB.
    tile_bytes = (in_rows + 8) * tile_b * 4
    vmem_limit = min(64 * 1024 * 1024,
                     max(4 * 1024 * 1024, 4 * (2 * tile_bytes + param_bytes)))

    grid_spec = pltpu.PrefetchScalarGridSpec(
        num_scalar_prefetch=0,
        grid=(num_tiles,),
        in_specs=[x_spec] + param_specs,
        out_specs=out_spec,
    )

    out = pl.pallas_call(
        kernel,
        out_shape=jax.ShapeDtypeStruct((8, b_pad), jnp.float32),
        grid_spec=grid_spec,
        compiler_params=pltpu.CompilerParams(
            dimension_semantics=("parallel",),   # v7x: 2 TCs split the batch
            vmem_limit_bytes=int(vmem_limit)),
        cost_estimate=cost,
    )(xT, *params)

    # Row 0 of the (8, b_pad) slab holds the predictions.
    return out[0, :B][:, None]


def _reference_forward(user_ids, item_ids, user_emb, item_emb, fc_params,
                       out_params):
    """Pure-JAX reference mirroring the PyTorch module (eval mode)."""
    x = jnp.concatenate([user_emb[user_ids], item_emb[item_ids]], axis=1)
    for w, b in fc_params:
        x = jnp.maximum(x @ w + b, 0.0)
    w_out, b_out = out_params
    return x @ w_out + b_out


if __name__ == "__main__":
    # REG(layers=[16, 8]) => emb_dim = layers[0] / 2 = 8.
    num_users, num_items, emb_dim = 64, 96, 8
    layers = [16, 8]
    batch = 200  # deliberately not a multiple of the batch tile

    key = jax.random.PRNGKey(0)
    k_ue, k_ie, k_uid, k_iid, k_params = jax.random.split(key, 5)

    user_emb = jax.random.normal(k_ue, (num_users, emb_dim), jnp.float32)
    item_emb = jax.random.normal(k_ie, (num_items, emb_dim), jnp.float32)
    user_ids = jax.random.randint(k_uid, (batch,), 0, num_users, jnp.int32)
    item_ids = jax.random.randint(k_iid, (batch,), 0, num_items, jnp.int32)

    # torch.nn.Linear-style uniform(+-1/sqrt(in)) init, deterministic.
    fc_params = []
    pkeys = jax.random.split(k_params, 2 * (len(layers) - 1) + 2)
    ki = 0
    for in_size, out_size in zip(layers[:-1], layers[1:]):
        bound = 1.0 / (in_size ** 0.5)
        w = jax.random.uniform(pkeys[ki], (in_size, out_size), jnp.float32,
                               -bound, bound)
        b = jax.random.uniform(pkeys[ki + 1], (out_size,), jnp.float32,
                               -bound, bound)
        ki += 2
        fc_params.append((w, b))
    bound = 1.0 / (layers[-1] ** 0.5)
    w_out = jax.random.uniform(pkeys[ki], (layers[-1], 1), jnp.float32,
                               -bound, bound)
    b_out = jax.random.uniform(pkeys[ki + 1], (1,), jnp.float32, -bound, bound)
    out_params = (w_out, b_out)

    # One-time parameter preparation (hoisted out of the forward path).
    prepared = prepare_reg_params(user_emb, item_emb, fc_params, out_params)
    fwd = jax.jit(lambda u, i: reg_forward(u, i, prepared))

    pred = jax.block_until_ready(fwd(user_ids, item_ids))

    ref = _reference_forward(user_ids, item_ids, user_emb, item_emb,
                             fc_params, out_params)
    assert pred.shape == (batch, 1)
    assert jnp.allclose(pred, ref, atol=1e-4, rtol=1e-4), (pred, ref)

    print("KERNEL_OK")
</pallas_src>

<mosaic_0001>
module attributes {stable_mosaic.version = 11 : i64} {
  func.func @kernel(%arg0: i32, %arg1: memref<16x256xf32, #tpu.memory_space<vmem>>, %arg2: memref<8x16xf32, #tpu.memory_space<vmem>>, %arg3: memref<8x1xf32, #tpu.memory_space<vmem>>, %arg4: memref<8x8xf32, #tpu.memory_space<vmem>>, %arg5: memref<8x1xf32, #tpu.memory_space<vmem>>, %arg6: memref<8x256xf32, #tpu.memory_space<vmem>>) attributes {dimension_semantics = [#tpu.dimension_semantics<parallel>], iteration_bounds = array<i64: 1>, scalar_prefetch = 0 : i64, scratch_operands = 0 : i64, tpu.core_type = #tpu.core_type<tc>, window_params = [{transform_indices = @transform_0, window_bounds = array<i64: 16, 256>}, {pipeline_mode = #tpu.pipeline_mode<synchronous>, transform_indices = @transform_1, window_bounds = array<i64: 8, 16>}, {pipeline_mode = #tpu.pipeline_mode<synchronous>, transform_indices = @transform_2, window_bounds = array<i64: 8, 1>}, {pipeline_mode = #tpu.pipeline_mode<synchronous>, transform_indices = @transform_3, window_bounds = array<i64: 8, 8>}, {pipeline_mode = #tpu.pipeline_mode<synchronous>, transform_indices = @transform_4, window_bounds = array<i64: 8, 1>}, {transform_indices = @transform_5, window_bounds = array<i64: 8, 256>}]} {
    %c0 = arith.constant 0 : index
    %c0_0 = arith.constant 0 : index
    %0 = vector.load %arg1[%c0, %c0_0] : memref<16x256xf32, #tpu.memory_space<vmem>>, vector<16x256xf32>
    %c0_1 = arith.constant 0 : index
    %c0_2 = arith.constant 0 : index
    %1 = vector.load %arg2[%c0_1, %c0_2] : memref<8x16xf32, #tpu.memory_space<vmem>>, vector<8x16xf32>
    %c0_3 = arith.constant 0 : index
    %c0_4 = arith.constant 0 : index
    %2 = vector.load %arg3[%c0_3, %c0_4] : memref<8x1xf32, #tpu.memory_space<vmem>>, vector<8x1xf32>
    %cst = arith.constant dense<0.000000e+00> : vector<8x256xf32>
    %3 = tpu.matmul %1, %0, %cst {dimension_numbers = #tpu.dot_dimension_numbers<[1], [0], [0], [1], [0, 0, 1, 1], [], []>} : vector<8x16xf32>, vector<16x256xf32>, vector<8x256xf32> -> vector<8x256xf32>
    %4 = vector.broadcast %2 : vector<8x1xf32> to vector<8x256xf32>
    %5 = arith.addf %3, %4 : vector<8x256xf32>
    %cst_5 = arith.constant 0.000000e+00 : f32
    %6 = vector.broadcast %cst_5 : f32 to vector<8x256xf32>
    %7 = arith.maximumf %5, %6 : vector<8x256xf32>
    %c0_6 = arith.constant 0 : index
    %c0_7 = arith.constant 0 : index
    %8 = vector.load %arg4[%c0_6, %c0_7] : memref<8x8xf32, #tpu.memory_space<vmem>>, vector<8x8xf32>
    %c0_8 = arith.constant 0 : index
    %c0_9 = arith.constant 0 : index
    %9 = vector.load %arg5[%c0_8, %c0_9] : memref<8x1xf32, #tpu.memory_space<vmem>>, vector<8x1xf32>
    %cst_10 = arith.constant dense<0.000000e+00> : vector<8x256xf32>
    %10 = tpu.matmul %8, %7, %cst_10 {dimension_numbers = #tpu.dot_dimension_numbers<[1], [0], [0], [1], [0, 0, 1, 1], [], []>} : vector<8x8xf32>, vector<8x256xf32>, vector<8x256xf32> -> vector<8x256xf32>
    %11 = vector.broadcast %9 : vector<8x1xf32> to vector<8x256xf32>
    %12 = arith.addf %10, %11 : vector<8x256xf32>
    %c0_11 = arith.constant 0 : index
    %c0_12 = arith.constant 0 : index
    %13 = vector.load %arg6[%c0_11, %c0_12] : memref<8x256xf32, #tpu.memory_space<vmem>>, vector<8x256xf32>
    tpu.vector_store %arg6[%c0_11, %c0_12], %12 {strides = array<i32>} : memref<8x256xf32, #tpu.memory_space<vmem>>, vector<8x256xf32>,
    return
  }
  func.func @transform_0(%arg0: i32) -> (i32, i32) {
    %c0_i32 = arith.constant 0 : i32
    %c0_i32_0 = arith.constant 0 : i32
    return %c0_i32, %arg0 : i32, i32
  }
  func.func @transform_1(%arg0: i32) -> (i32, i32) {
    %c0_i32 = arith.constant 0 : i32
    %c0_i32_0 = arith.constant 0 : i32
    %c0_i32_1 = arith.constant 0 : i32
    return %c0_i32, %c0_i32_0 : i32, i32
  }
  func.func @transform_2(%arg0: i32) -> (i32, i32) {
    %c0_i32 = arith.constant 0 : i32
    %c0_i32_0 = arith.constant 0 : i32
    %c0_i32_1 = arith.constant 0 : i32
    return %c0_i32, %c0_i32_0 : i32, i32
  }
  func.func @transform_3(%arg0: i32) -> (i32, i32) {
    %c0_i32 = arith.constant 0 : i32
    %c0_i32_0 = arith.constant 0 : i32
    %c0_i32_1 = arith.constant 0 : i32
    return %c0_i32, %c0_i32_0 : i32, i32
  }
  func.func @transform_4(%arg0: i32) -> (i32, i32) {
    %c0_i32 = arith.constant 0 : i32
    %c0_i32_0 = arith.constant 0 : i32
    %c0_i32_1 = arith.constant 0 : i32
    return %c0_i32, %c0_i32_0 : i32, i32
  }
  func.func @transform_5(%arg0: i32) -> (i32, i32) {
    %c0_i32 = arith.constant 0 : i32
    %c0_i32_0 = arith.constant 0 : i32
    return %c0_i32, %arg0 : i32, i32
  }
}

</mosaic_0001>

<bundles_post_ra>
// kernel: _lambda_.1
= control target key start
LH: loop header
LB: loop body
LE: loop exit
PB: predicated region body
PF: predicated region fallthrough
CT: control target
= control target key end

     0   :  { %v205_v3 = vmov 0.0   ;;  %v206_v4 = vmov 0   ;;  %vm31_vm0 = vcmask 130048   ;;  %vm115_vm1 = vcmask 64512   ;;  %s267_s0 = inlined_call_operand.vmem [shape: f32[16,256], index: 0, kind: input, shape index: {}]   ;;  %s268_s2 = inlined_call_operand.vmem [shape: f32[8,1], index: 2, kind: input, shape index: {}]   ;;  %s269_s4 = inlined_call_operand.vmem [shape: f32[8,1], index: 4, kind: input, shape index: {}]   ;;  %s270_s1 = inlined_call_operand.vmem [shape: f32[8,16], index: 1, kind: input, shape index: {}]   ;;  %s271_s3 = inlined_call_operand.vmem [shape: f32[8,8], index: 3, kind: input, shape index: {}]   ;;  %s272_s5 = inlined_call_operand.vmem [shape: f32[8,256], index: 5, kind: output, shape index: {}]  }
   0x1   :  { %v21_v0 = vld [vmem:[%s267_s0 + $0x8] sm:$0xff]  ;;  %v23_v1 = vld [vmem:[%s267_s0 + $0x18] sm:$0xff]  ;;  %v20_v2 = vld [vmem:[%s267_s0] sm:$0xff]  ;;  %99 = vmatprep.mubr.f32.mxu0 %v205_v3  ;;  %204 = vset.pattern.permute.xlu0 %v206_v4 }
   0x2   :  { %v198_v5 = vpack.c.bf16 %v23_v1, %v21_v0  ;;  %v22_v6 = vld [vmem:[%s267_s0 + $0x10] sm:$0xff]  ;;  %v25_v7 = vld [vmem:[%s268_s2] sm:$0xff]  ;;  %183 = vmatprep.mubr.f32.mxu1 %v205_v3 }
   0x3   :  { %v200_v8 = vpack.c.bf16 %v22_v6, %v20_v2  ;;  %28 = vperm.xlu0 %204, %v25_v7   ;;  %v109_v9 = vld [vmem:[%s269_s4] sm:$0xff] }
   0x4   :  { %199 = vmatprep.subr.bf16.mxu0 %v198_v5  ;;  %v24_v10 = vld [vmem:[%s270_s1] sm:$0xff] }
   0x5   :  { %201 = vmatpush1.bf16.msra.mxu0 %v200_v8  ;;  %v108_v18 = vld [vmem:[%s271_s3] sm:$0xff] }
   0x7   :  { %112 = vperm.xlu0 %204, %v109_v9  }
   0x8   :  { %196 = vmatmul.mubr.msk.f32.vlgmr.msra.gmra.mrb[0].mxu0 %vm31_vm0, %v24_v10 }
  0x82   :  { %v29_v11 = vpop.permute.xlu0 %28 }
  0x86   :  { %v113_v19 = vpop.permute.xlu0 %112 }
  0xdb   :  { %v101_v12 = vpop.f32.mrb[0].mxu0 }
  0xdc   :  { %v102_v13 = vadd.f32 %v101_v12, %v29_v11  ;;  %v103_v14 = vpop.f32.mrb[1].mxu0 }
  0xdd   :  { %v104_v15 = vadd.f32 %v103_v14, %v29_v11 }
  0xde   :  { %v106_v17 = vmax.f32 %v102_v13, 0.0 }
  0xdf   :  { %v107_v16 = vmax.f32 %v104_v15, 0.0 }
  0xe1   :  { %119 = vmatprep.subr.mxu1 %v107_v16 }
  0xe2   :  { %120 = vmatpush1.msra.mxu1 %v106_v17 }
  0xe3   :  { %197 = vmatmul.mubr.msk.f32.vlgmr.msra.gmra.mrb[0].mxu1 %vm115_vm1, %v108_v18 }
 0x1b6   :  { %v185_v20 = vpop.f32.mrb[0].mxu1 }
 0x1b7   :  { %v186_v21 = vadd.f32 %v185_v20, %v113_v19  ;;  %v187_v22 = vpop.f32.mrb[1].mxu1 }
 0x1b8   :  { %v188_v23 = vadd.f32 %v187_v22, %v113_v19 }
 0x1b9   :  { %190 = vst [vmem:[%s272_s5] sm:$0xff] %v186_v21 }
 0x1ba   :  { %191 = vst [vmem:[%s272_s5 + $0x8] sm:$0xff] %v188_v23 }

</bundles_post_ra>
